<compile_context>
chip_gen: v6e
topology: v6e:2x2x1
jax: 0.10.0
libtpu: 0.0.40
codegen_flags: <defaults>
</compile_context>

<pallas_src>
import functools
import math

import jax
import jax.numpy as jnp
from jax import lax
from jax.experimental import pallas as pl
from jax.experimental.pallas import tpu as pltpu


_NEG_MASK = -1.0e9    # same fill value as torch masked_fill in the module
_NEG_PAD = -1.0e30    # sentinel for padded key columns (strictly below _NEG_MASK)


def _cdiv(a, b):
    return -(-a // b)


def _vmem_limit_bytes():
    """~85% of physical VMEM (v5e/v6e 128 MiB, v7x 64 MiB per TensorCore)."""
    cap = 64 * 1024 * 1024
    try:
        info = pltpu.get_tpu_info()
        cap = int(getattr(info, "vmem_capacity_bytes", cap) or cap)
    except Exception:
        pass
    return max(int(cap * 0.85), 32 * 1024 * 1024)


def _attn_tile_body(q_ref, k_ref, v_ref, mask_ref, ctx_ref, attn_ref,
                    m_scr, l_scr, acc_scr, mj_scr, *,
                    d_orig, l_k, tile_k, n_k_tiles, pad_k):
    """One (batch, q-tile, k-tile) step of flash-style attention."""
    ki = pl.program_id(2)

    @pl.when(ki == 0)
    def _init():
        m_scr[...] = jnp.full_like(m_scr, -jnp.inf)
        l_scr[...] = jnp.zeros_like(l_scr)
        acc_scr[...] = jnp.zeros_like(acc_scr)

    q = q_ref[...]                        # (TQ, D)   native dtype
    k = k_ref[...]                        # (TK, D)
    v = v_ref[...]                        # (TK, D_v)

    # Fold 1/sqrt(d) into Q (O(TQ*D) instead of O(TQ*TK) scaling).
    q = q * jnp.asarray(1.0 / math.sqrt(d_orig), dtype=q.dtype)

    # Q @ K^T on the MXU without an explicit transpose of K, f32 accumulation.
    s = lax.dot_general(q, k, dimension_numbers=(((1,), (1,)), ((), ())),
                        preferred_element_type=jnp.float32)     # (TQ, TK) f32

    if mask_ref is not None:
        # In-kernel compare on the caller's dtype (no wrapper cast/pad pass).
        s = jnp.where(mask_ref[...] == 0, jnp.float32(_NEG_MASK), s)

    if pad_k:
        # Padding only exists in the LAST k tile; gate the extra VPU work.
        # (Also zeroes possibly-garbage V rows read past the array end.)
        def _mask_padding(operands):
            s_in, v_in = operands
            col = ki * tile_k + lax.broadcasted_iota(jnp.int32, s_in.shape, 1)
            s_out = jnp.where(col < l_k, s_in, jnp.float32(_NEG_PAD))
            row = ki * tile_k + lax.broadcasted_iota(
                jnp.int32, (v_in.shape[0], 1), 0)
            v_out = jnp.where(row < l_k, v_in, jnp.zeros_like(v_in))
            return s_out, v_out

        s, v = lax.cond(ki == n_k_tiles - 1, _mask_padding,
                        lambda operands: operands, (s, v))

    # Online softmax accumulation of the context.
    m_prev = m_scr[...]                                          # (TQ, 1)
    m_new = jnp.maximum(m_prev, jnp.max(s, axis=-1, keepdims=True))
    alpha = jnp.exp(m_prev - m_new)
    p = jnp.exp(s - m_new)                                       # (TQ, TK) f32

    l_scr[...] = alpha * l_scr[...] + jnp.sum(p, axis=-1, keepdims=True)
    acc_scr[...] = alpha * acc_scr[...] + jnp.dot(
        p.astype(v.dtype), v, preferred_element_type=jnp.float32)
    m_scr[...] = m_new

    # Stash the unnormalized probabilities for this tile with a single
    # lane-aligned dynamic store, and record the running max it used.
    p_cast = p.astype(attn_ref.dtype)
    if n_k_tiles == 1:
        attn_ref[...] = p_cast
    else:
        start = pl.multiple_of(ki * tile_k, 128)
        attn_ref[:, pl.ds(start, tile_k)] = p_cast
        lane = lax.broadcasted_iota(jnp.int32, mj_scr.shape, 1)
        mj_scr[...] = jnp.where(lane == ki, m_new, mj_scr[...])

    @pl.when(ki == n_k_tiles - 1)
    def _finalize():
        l = l_scr[...]                                           # (TQ, 1)
        # Context: approx reciprocal (EUP vrcp) is plenty accurate here.
        ctx_ref[...] = (acc_scr[...] *
                        pl.reciprocal(l, approx=True)).astype(ctx_ref.dtype)
        # Returned probabilities: exact normalization (rows sum to 1).
        inv_l = 1.0 / l
        if n_k_tiles == 1:
            attn_ref[...] = (attn_ref[...].astype(jnp.float32) *
                             inv_l).astype(attn_ref.dtype)
        else:
            # Per-tile rescale exp(m_j - m_final) * inv_l: only a tiny
            # (TQ, n_k) exp plus VPU muls — no second full exp pass.
            # (Unrolled, but runs once per q tile, not once per k step.)
            scale = jnp.exp(mj_scr[...] - m_scr[...]) * inv_l    # (TQ, n_k)
            for j in range(n_k_tiles):
                sl = slice(j * tile_k, (j + 1) * tile_k)
                tile = attn_ref[:, sl].astype(jnp.float32)
                attn_ref[:, sl] = (tile * scale[:, j:j + 1]).astype(attn_ref.dtype)


def _attn_kernel_masked(q_ref, k_ref, v_ref, mask_ref, ctx_ref, attn_ref,
                        m_scr, l_scr, acc_scr, mj_scr, **static):
    _attn_tile_body(q_ref, k_ref, v_ref, mask_ref, ctx_ref, attn_ref,
                    m_scr, l_scr, acc_scr, mj_scr, **static)


def _attn_kernel_nomask(q_ref, k_ref, v_ref, ctx_ref, attn_ref,
                        m_scr, l_scr, acc_scr, mj_scr, **static):
    _attn_tile_body(q_ref, k_ref, v_ref, None, ctx_ref, attn_ref,
                    m_scr, l_scr, acc_scr, mj_scr, **static)


def scaled_dot_product_attention(query, key, value, mask=None):
    """query: [B, L_q, D], key: [B, L_k, D], value: [B, L_k, D_v],
    mask: optional [B, L_q, L_k] (entries equal to 0 are masked out).
    Returns (context [B, L_q, D_v], p_attn [B, L_q, L_k])."""
    B, L_q, D = query.shape
    _, L_k, _ = key.shape
    D_v = value.shape[-1]
    out_dtype = query.dtype
    out_bytes = jnp.dtype(out_dtype).itemsize

    vmem_limit = _vmem_limit_bytes()

    # K tile: full L_k when it fits one tile, else 512 (lane-aligned).
    # TODO(synk): on v7x, TK=256 may lower vreg/spill pressure; needs measurement.
    TK = L_k if L_k <= 512 else 512
    n_k = _cdiv(L_k, TK)
    L_k_p = n_k * TK                       # attention-row width inside the kernel
    pad_k = L_k_p != L_k

    # Q tile: largest tile whose resident (double-buffered) attention row stays
    # under ~40% of the VMEM budget (bounds VMEM on v7x; keeps 256 on v5e/v6e).
    # TODO(synk): for extreme L_k (attn row > budget even at TQ=8) a pipelined
    # (TQ, TK) attn output + second normalization pass would be needed.
    if L_q <= 256:
        tq_cands = [L_q] + [t for t in (128, 64, 32, 16, 8) if t < L_q]
    else:
        tq_cands = [256, 128, 64, 32, 16, 8]
    TQ = tq_cands[-1]
    for t in tq_cands:
        if 2 * t * L_k_p * out_bytes <= 0.4 * vmem_limit:
            TQ = t
            break
    n_q = _cdiv(L_q, TQ)

    static = dict(d_orig=D, l_k=L_k, tile_k=TK, n_k_tiles=n_k, pad_k=pad_k)

    # Unpadded inputs: full last dims as block dims (Mosaic pads lanes for free).
    q_spec = pl.BlockSpec((None, TQ, D), lambda b, qi, ki: (b, qi, 0))
    ctx_spec = pl.BlockSpec((None, TQ, D_v), lambda b, qi, ki: (b, qi, 0))
    attn_spec = pl.BlockSpec((None, TQ, L_k_p), lambda b, qi, ki: (b, qi, 0))

    scratch_shapes = [
        pltpu.VMEM((TQ, 1), jnp.float32),               # running max
        pltpu.VMEM((TQ, 1), jnp.float32),               # running sum
        pltpu.VMEM((TQ, D_v), jnp.float32),             # context accumulator
        pltpu.VMEM((TQ, max(n_k, 1)), jnp.float32),     # per-k-tile running max
    ]

    def _kv_spec(block_shape, index_map, depth):
        if depth is not None:
            try:
                return pl.BlockSpec(block_shape, index_map,
                                    pipeline_mode=pl.Buffered(depth))
            except Exception:
                pass
        return pl.BlockSpec(block_shape, index_map)

    def _run(depth):
        k_spec = _kv_spec((None, TK, D), lambda b, qi, ki: (b, ki, 0), depth)
        v_spec = _kv_spec((None, TK, D_v), lambda b, qi, ki: (b, ki, 0), depth)
        if mask is not None:
            m_spec = _kv_spec((None, TQ, TK), lambda b, qi, ki: (b, qi, ki), depth)
            in_specs = [q_spec, k_spec, v_spec, m_spec]
            inputs = (query, key, value, mask)
            kernel = functools.partial(_attn_kernel_masked, **static)
        else:
            # Specialized variant: no mask input at all (no constant-ones DMA).
            in_specs = [q_spec, k_spec, v_spec]
            inputs = (query, key, value)
            kernel = functools.partial(_attn_kernel_nomask, **static)

        return pl.pallas_call(
            kernel,
            grid=(B, n_q, n_k),
            in_specs=in_specs,
            out_specs=(ctx_spec, attn_spec),
            out_shape=(jax.ShapeDtypeStruct((B, L_q, D_v), out_dtype),
                       jax.ShapeDtypeStruct((B, L_q, L_k_p), out_dtype)),
            scratch_shapes=scratch_shapes,
            compiler_params=pltpu.CompilerParams(
                dimension_semantics=("parallel", "parallel", "arbitrary"),
                vmem_limit_bytes=vmem_limit,
            ),
        )(*inputs)

    # Deeper K/V/mask buffering hides DMA issue latency on the inner k loop
    # when there are enough k steps and VMEM headroom remains.
    itemsize = jnp.dtype(key.dtype).itemsize
    per_buf = (TK * D + TK * D_v) * itemsize + TQ * D * jnp.dtype(query.dtype).itemsize
    if mask is not None:
        per_buf += TQ * TK * jnp.dtype(mask.dtype).itemsize
    resident = 2 * TQ * L_k_p * out_bytes
    depth = 3 if (n_k >= 3 and hasattr(pl, "Buffered")
                  and resident + 3 * per_buf <= 0.8 * vmem_limit) else None

    if depth is not None:
        try:
            ctx_o, attn_o = _run(depth)
        except Exception:
            ctx_o, attn_o = _run(None)
    else:
        ctx_o, attn_o = _run(None)

    if pad_k:
        attn_o = attn_o[:, :, :L_k]
    return ctx_o, attn_o


def _reference(query, key, value, mask=None):
    d = query.shape[-1]
    scores = jnp.einsum("bqd,bkd->bqk", query, key) / jnp.sqrt(jnp.float32(d))
    if mask is not None:
        scores = jnp.where(mask == 0, -1.0e9, scores)
    p = jax.nn.softmax(scores, axis=-1)
    return jnp.einsum("bqk,bkv->bqv", p, value), p


if __name__ == "__main__":
    root = jax.random.PRNGKey(0)
    kq, kk, kv, km = jax.random.split(root, 4)

    # Small shapes matching the module's [B, L_q, D]/[B, L_k, D]/[B, L_k, D_v] layout.
    B, L_q, L_k, D, D_v = 2, 8, 8, 32, 32
    query = jax.random.normal(kq, (B, L_q, D), dtype=jnp.float32)
    key_t = jax.random.normal(kk, (B, L_k, D), dtype=jnp.float32)
    value = jax.random.normal(kv, (B, L_k, D_v), dtype=jnp.float32)
    mask = (jax.random.uniform(km, (B, L_q, L_k)) > 0.2).astype(jnp.float32)

    # Tolerance covers the approx (EUP) reciprocal used for the context.
    TOL = dict(atol=2e-3, rtol=2e-3)

    ctx, p_attn = scaled_dot_product_attention(query, key_t, value, mask=mask)
    jax.block_until_ready((ctx, p_attn))
    ref_ctx, ref_p = _reference(query, key_t, value, mask=mask)
    assert ctx.shape == ref_ctx.shape and p_attn.shape == ref_p.shape
    assert jnp.allclose(ctx, ref_ctx, **TOL)
    assert jnp.allclose(p_attn, ref_p, **TOL)

    # mask=None path (specialized kernel variant, no mask DMA).
    ctx2, p2 = scaled_dot_product_attention(query, key_t, value, mask=None)
    jax.block_until_ready((ctx2, p2))
    ref_ctx2, ref_p2 = _reference(query, key_t, value, mask=None)
    assert jnp.allclose(ctx2, ref_ctx2, **TOL)
    assert jnp.allclose(p2, ref_p2, **TOL)

    # Multi-k-tile path: online softmax across k tiles, in-kernel key padding,
    # and a fully-masked row (uniform attention, PyTorch behavior).
    kq2, kk2, kv2, km2 = jax.random.split(jax.random.PRNGKey(0), 4)
    B2, L_q2, L_k2, D2, D_v2 = 2, 64, 640, 32, 32
    q2 = jax.random.normal(kq2, (B2, L_q2, D2), dtype=jnp.float32)
    k2 = jax.random.normal(kk2, (B2, L_k2, D2), dtype=jnp.float32)
    v2 = jax.random.normal(kv2, (B2, L_k2, D_v2), dtype=jnp.float32)
    m2 = (jax.random.uniform(km2, (B2, L_q2, L_k2)) > 0.1).astype(jnp.float32)
    m2 = m2.at[:, 0, :].set(0.0)
    ctx3, p3 = scaled_dot_product_attention(q2, k2, v2, mask=m2)
    jax.block_until_ready((ctx3, p3))
    ref_ctx3, ref_p3 = _reference(q2, k2, v2, mask=m2)
    assert jnp.allclose(ctx3, ref_ctx3, **TOL)
    assert jnp.allclose(p3, ref_p3, **TOL)

    print("KERNEL_OK")
</pallas_src>

<mosaic_0001>
module attributes {stable_mosaic.version = 11 : i64} {
  func.func @_attn_kernel_masked(%arg0: i32, %arg1: i32, %arg2: i32, %arg3: memref<1x8x32xf32, #tpu.memory_space<vmem>>, %arg4: memref<1x8x32xf32, #tpu.memory_space<vmem>>, %arg5: memref<1x8x32xf32, #tpu.memory_space<vmem>>, %arg6: memref<1x8x8xf32, #tpu.memory_space<vmem>>, %arg7: memref<1x8x32xf32, #tpu.memory_space<vmem>>, %arg8: memref<1x8x8xf32, #tpu.memory_space<vmem>>, %arg9: memref<8x1xf32, #tpu.memory_space<vmem>>, %arg10: memref<8x1xf32, #tpu.memory_space<vmem>>, %arg11: memref<8x32xf32, #tpu.memory_space<vmem>>, %arg12: memref<8x1xf32, #tpu.memory_space<vmem>>) attributes {dimension_semantics = [#tpu.dimension_semantics<parallel>, #tpu.dimension_semantics<parallel>, #tpu.dimension_semantics<arbitrary>], iteration_bounds = array<i64: 2, 1, 1>, scalar_prefetch = 0 : i64, scratch_operands = 4 : i64, tpu.core_type = #tpu.core_type<tc>, window_params = [{transform_indices = @transform_0, window_bounds = array<i64: 1, 8, 32>}, {transform_indices = @transform_1, window_bounds = array<i64: 1, 8, 32>}, {transform_indices = @transform_2, window_bounds = array<i64: 1, 8, 32>}, {transform_indices = @transform_3, window_bounds = array<i64: 1, 8, 8>}, {transform_indices = @transform_4, window_bounds = array<i64: 1, 8, 32>}, {transform_indices = @transform_5, window_bounds = array<i64: 1, 8, 8>}]} {
    %c0_i32 = arith.constant 0 : i32
    %0 = arith.cmpi eq, %arg2, %c0_i32 : i32
    %1 = arith.extui %0 : i1 to i32
    %c0_i32_0 = arith.constant 0 : i32
    %2 = arith.cmpi ne, %1, %c0_i32_0 : i32
    scf.if %2 {
      %cst_35 = arith.constant 0xFF800000 : f32
      %46 = vector.broadcast %cst_35 : f32 to vector<8x1xf32>
      %c0_36 = arith.constant 0 : index
      %c0_37 = arith.constant 0 : index
      %47 = vector.load %arg9[%c0_36, %c0_37] : memref<8x1xf32, #tpu.memory_space<vmem>>, vector<8x1xf32>
      tpu.vector_store %arg9[%c0_36, %c0_37], %46 {strides = array<i32>} : memref<8x1xf32, #tpu.memory_space<vmem>>, vector<8x1xf32>,
      %cst_38 = arith.constant 0.000000e+00 : f32
      %48 = vector.broadcast %cst_38 : f32 to vector<8x1xf32>
      %c0_39 = arith.constant 0 : index
      %c0_40 = arith.constant 0 : index
      %49 = vector.load %arg10[%c0_39, %c0_40] : memref<8x1xf32, #tpu.memory_space<vmem>>, vector<8x1xf32>
      tpu.vector_store %arg10[%c0_39, %c0_40], %48 {strides = array<i32>} : memref<8x1xf32, #tpu.memory_space<vmem>>, vector<8x1xf32>,
      %cst_41 = arith.constant 0.000000e+00 : f32
      %50 = vector.broadcast %cst_41 : f32 to vector<8x32xf32>
      %c0_42 = arith.constant 0 : index
      %c0_43 = arith.constant 0 : index
      %51 = vector.load %arg11[%c0_42, %c0_43] : memref<8x32xf32, #tpu.memory_space<vmem>>, vector<8x32xf32>
      tpu.vector_store %arg11[%c0_42, %c0_43], %50 {strides = array<i32>} : memref<8x32xf32, #tpu.memory_space<vmem>>, vector<8x32xf32>,
    } else {
    }
    %c0 = arith.constant 0 : index
    %c0_1 = arith.constant 0 : index
    %c0_2 = arith.constant 0 : index
    %3 = vector.load %arg3[%c0, %c0_1, %c0_2] : memref<1x8x32xf32, #tpu.memory_space<vmem>>, vector<1x8x32xf32>
    %4 = vector.shape_cast %3 : vector<1x8x32xf32> to vector<8x32xf32>
    %c0_3 = arith.constant 0 : index
    %c0_4 = arith.constant 0 : index
    %c0_5 = arith.constant 0 : index
    %5 = vector.load %arg4[%c0_3, %c0_4, %c0_5] : memref<1x8x32xf32, #tpu.memory_space<vmem>>, vector<1x8x32xf32>
    %6 = vector.shape_cast %5 : vector<1x8x32xf32> to vector<8x32xf32>
    %c0_6 = arith.constant 0 : index
    %c0_7 = arith.constant 0 : index
    %c0_8 = arith.constant 0 : index
    %7 = vector.load %arg5[%c0_6, %c0_7, %c0_8] : memref<1x8x32xf32, #tpu.memory_space<vmem>>, vector<1x8x32xf32>
    %8 = vector.shape_cast %7 : vector<1x8x32xf32> to vector<8x32xf32>
    %cst = arith.constant 0.176776692 : f32
    %9 = vector.broadcast %cst : f32 to vector<8x32xf32>
    %10 = arith.mulf %4, %9 : vector<8x32xf32>
    %cst_9 = arith.constant dense<0.000000e+00> : vector<8x8xf32>
    %11 = tpu.matmul %10, %6, %cst_9 {dimension_numbers = #tpu.dot_dimension_numbers<[1], [1], [0], [0], [0, 0, 1, 0], [], []>} : vector<8x32xf32>, vector<8x32xf32>, vector<8x8xf32> -> vector<8x8xf32>
    %c0_10 = arith.constant 0 : index
    %c0_11 = arith.constant 0 : index
    %c0_12 = arith.constant 0 : index
    %12 = vector.load %arg6[%c0_10, %c0_11, %c0_12] : memref<1x8x8xf32, #tpu.memory_space<vmem>>, vector<1x8x8xf32>
    %13 = vector.shape_cast %12 : vector<1x8x8xf32> to vector<8x8xf32>
    %cst_13 = arith.constant 0.000000e+00 : f32
    %14 = vector.broadcast %cst_13 : f32 to vector<8x8xf32>
    %15 = arith.cmpf oeq, %13, %14 : vector<8x8xf32>
    %cst_14 = arith.constant -1.000000e+09 : f32
    %16 = vector.broadcast %cst_14 : f32 to vector<8x8xf32>
    %17 = arith.select %15, %16, %11 : vector<8x8xi1>, vector<8x8xf32>
    %c0_15 = arith.constant 0 : index
    %c0_16 = arith.constant 0 : index
    %18 = vector.load %arg9[%c0_15, %c0_16] : memref<8x1xf32, #tpu.memory_space<vmem>>, vector<8x1xf32>
    %cst_17 = arith.constant dense<0xFF800000> : vector<8xf32>
    %19 = vector.multi_reduction <maximumf>, %17, %cst_17 [1] : vector<8x8xf32> to vector<8xf32>
    %20 = vector.shape_cast %19 : vector<8xf32> to vector<8x1xf32>
    %21 = arith.maximumf %18, %20 : vector<8x1xf32>
    %22 = arith.subf %18, %21 : vector<8x1xf32>
    %23 = math.exp %22 : vector<8x1xf32>
    %24 = vector.broadcast %21 : vector<8x1xf32> to vector<8x8xf32>
    %25 = arith.subf %17, %24 : vector<8x8xf32>
    %26 = math.exp %25 : vector<8x8xf32>
    %c0_18 = arith.constant 0 : index
    %c0_19 = arith.constant 0 : index
    %27 = vector.load %arg10[%c0_18, %c0_19] : memref<8x1xf32, #tpu.memory_space<vmem>>, vector<8x1xf32>
    %28 = arith.mulf %23, %27 : vector<8x1xf32>
    %cst_20 = arith.constant dense<0.000000e+00> : vector<8xf32>
    %29 = vector.multi_reduction <add>, %26, %cst_20 [1] : vector<8x8xf32> to vector<8xf32>
    %30 = vector.shape_cast %29 : vector<8xf32> to vector<8x1xf32>
    %31 = arith.addf %28, %30 : vector<8x1xf32>
    %c0_21 = arith.constant 0 : index
    %c0_22 = arith.constant 0 : index
    %32 = vector.load %arg10[%c0_21, %c0_22] : memref<8x1xf32, #tpu.memory_space<vmem>>, vector<8x1xf32>
    tpu.vector_store %arg10[%c0_21, %c0_22], %31 {strides = array<i32>} : memref<8x1xf32, #tpu.memory_space<vmem>>, vector<8x1xf32>,
    %c0_23 = arith.constant 0 : index
    %c0_24 = arith.constant 0 : index
    %33 = vector.load %arg11[%c0_23, %c0_24] : memref<8x32xf32, #tpu.memory_space<vmem>>, vector<8x32xf32>
    %34 = vector.broadcast %23 : vector<8x1xf32> to vector<8x32xf32>
    %35 = arith.mulf %34, %33 : vector<8x32xf32>
    %cst_25 = arith.constant dense<0.000000e+00> : vector<8x32xf32>
    %36 = tpu.matmul %26, %8, %cst_25 {dimension_numbers = #tpu.dot_dimension_numbers<[1], [0], [0], [1], [0, 0, 1, 1], [], []>} : vector<8x8xf32>, vector<8x32xf32>, vector<8x32xf32> -> vector<8x32xf32>
    %37 = arith.addf %35, %36 : vector<8x32xf32>
    %c0_26 = arith.constant 0 : index
    %c0_27 = arith.constant 0 : index
    %38 = vector.load %arg11[%c0_26, %c0_27] : memref<8x32xf32, #tpu.memory_space<vmem>>, vector<8x32xf32>
    tpu.vector_store %arg11[%c0_26, %c0_27], %37 {strides = array<i32>} : memref<8x32xf32, #tpu.memory_space<vmem>>, vector<8x32xf32>,
    %c0_28 = arith.constant 0 : index
    %c0_29 = arith.constant 0 : index
    %39 = vector.load %arg9[%c0_28, %c0_29] : memref<8x1xf32, #tpu.memory_space<vmem>>, vector<8x1xf32>
    tpu.vector_store %arg9[%c0_28, %c0_29], %21 {strides = array<i32>} : memref<8x1xf32, #tpu.memory_space<vmem>>, vector<8x1xf32>,
    %c0_30 = arith.constant 0 : index
    %c0_31 = arith.constant 0 : index
    %c0_32 = arith.constant 0 : index
    %40 = vector.load %arg8[%c0_30, %c0_31, %c0_32] : memref<1x8x8xf32, #tpu.memory_space<vmem>>, vector<1x8x8xf32>
    %41 = vector.shape_cast %40 : vector<1x8x8xf32> to vector<8x8xf32>
    %42 = vector.shape_cast %26 : vector<8x8xf32> to vector<1x8x8xf32>
    tpu.vector_store %arg8[%c0_30, %c0_31, %c0_32], %42 {strides = array<i32>} : memref<1x8x8xf32, #tpu.memory_space<vmem>>, vector<1x8x8xf32>,
    %c0_i32_33 = arith.constant 0 : i32
    %43 = arith.cmpi eq, %arg2, %c0_i32_33 : i32
    %44 = arith.extui %43 : i1 to i32
    %c0_i32_34 = arith.constant 0 : i32
    %45 = arith.cmpi ne, %44, %c0_i32_34 : i32
    scf.if %45 {
      %c0_35 = arith.constant 0 : index
      %c0_36 = arith.constant 0 : index
      %46 = vector.load %arg10[%c0_35, %c0_36] : memref<8x1xf32, #tpu.memory_space<vmem>>, vector<8x1xf32>
      %c0_37 = arith.constant 0 : index
      %c0_38 = arith.constant 0 : index
      %47 = vector.load %arg11[%c0_37, %c0_38] : memref<8x32xf32, #tpu.memory_space<vmem>>, vector<8x32xf32>
      %48 = tpu.reciprocal %46 {approx = true} : vector<8x1xf32> -> vector<8x1xf32>
      %49 = vector.broadcast %48 : vector<8x1xf32> to vector<8x32xf32>
      %50 = arith.mulf %47, %49 : vector<8x32xf32>
      %c0_39 = arith.constant 0 : index
      %c0_40 = arith.constant 0 : index
      %c0_41 = arith.constant 0 : index
      %51 = vector.load %arg7[%c0_39, %c0_40, %c0_41] : memref<1x8x32xf32, #tpu.memory_space<vmem>>, vector<1x8x32xf32>
      %52 = vector.shape_cast %51 : vector<1x8x32xf32> to vector<8x32xf32>
      %53 = vector.shape_cast %50 : vector<8x32xf32> to vector<1x8x32xf32>
      tpu.vector_store %arg7[%c0_39, %c0_40, %c0_41], %53 {strides = array<i32>} : memref<1x8x32xf32, #tpu.memory_space<vmem>>, vector<1x8x32xf32>,
      %cst_42 = arith.constant 1.000000e+00 : f32
      %54 = vector.broadcast %cst_42 : f32 to vector<8x1xf32>
      %55 = arith.divf %54, %46 : vector<8x1xf32>
      %c0_43 = arith.constant 0 : index
      %c0_44 = arith.constant 0 : index
      %c0_45 = arith.constant 0 : index
      %56 = vector.load %arg8[%c0_43, %c0_44, %c0_45] : memref<1x8x8xf32, #tpu.memory_space<vmem>>, vector<1x8x8xf32>
      %57 = vector.shape_cast %56 : vector<1x8x8xf32> to vector<8x8xf32>
      %58 = vector.broadcast %55 : vector<8x1xf32> to vector<8x8xf32>
      %59 = arith.mulf %57, %58 : vector<8x8xf32>
      %c0_46 = arith.constant 0 : index
      %c0_47 = arith.constant 0 : index
      %c0_48 = arith.constant 0 : index
      %60 = vector.load %arg8[%c0_46, %c0_47, %c0_48] : memref<1x8x8xf32, #tpu.memory_space<vmem>>, vector<1x8x8xf32>
      %61 = vector.shape_cast %60 : vector<1x8x8xf32> to vector<8x8xf32>
      %62 = vector.shape_cast %59 : vector<8x8xf32> to vector<1x8x8xf32>
      tpu.vector_store %arg8[%c0_46, %c0_47, %c0_48], %62 {strides = array<i32>} : memref<1x8x8xf32, #tpu.memory_space<vmem>>, vector<1x8x8xf32>,
    } else {
    }
    return
  }
  func.func @transform_0(%arg0: i32, %arg1: i32, %arg2: i32) -> (i32, i32, i32) {
    %c0_i32 = arith.constant 0 : i32
    %c0_i32_0 = arith.constant 0 : i32
    return %arg0, %arg1, %c0_i32 : i32, i32, i32
  }
  func.func @transform_1(%arg0: i32, %arg1: i32, %arg2: i32) -> (i32, i32, i32) {
    %c0_i32 = arith.constant 0 : i32
    %c0_i32_0 = arith.constant 0 : i32
    return %arg0, %arg2, %c0_i32 : i32, i32, i32
  }
  func.func @transform_2(%arg0: i32, %arg1: i32, %arg2: i32) -> (i32, i32, i32) {
    %c0_i32 = arith.constant 0 : i32
    %c0_i32_0 = arith.constant 0 : i32
    return %arg0, %arg2, %c0_i32 : i32, i32, i32
  }
  func.func @transform_3(%arg0: i32, %arg1: i32, %arg2: i32) -> (i32, i32, i32) {
    %c0_i32 = arith.constant 0 : i32
    return %arg0, %arg1, %arg2 : i32, i32, i32
  }
  func.func @transform_4(%arg0: i32, %arg1: i32, %arg2: i32) -> (i32, i32, i32) {
    %c0_i32 = arith.constant 0 : i32
    %c0_i32_0 = arith.constant 0 : i32
    return %arg0, %arg1, %c0_i32 : i32, i32, i32
  }
  func.func @transform_5(%arg0: i32, %arg1: i32, %arg2: i32) -> (i32, i32, i32) {
    %c0_i32 = arith.constant 0 : i32
    %c0_i32_0 = arith.constant 0 : i32
    return %arg0, %arg1, %c0_i32 : i32, i32, i32
  }
}

</mosaic_0001>

<bundles_post_ra>
// kernel: tpu_custom_call.1
= control target key start
LH: loop header
LB: loop body
LE: loop exit
PB: predicated region body
PF: predicated region fallthrough
CT: control target
= control target key end

     0   :  { %s1522_s0 = inlined_call_operand.hbm [shape: f32[2,8,32], index: 0, kind: input, shape index: {}]   ;;  %s1523_s1 = inlined_call_operand.hbm [shape: f32[2,8,32], index: 1, kind: input, shape index: {}]   ;;  %s1524_s2 = inlined_call_operand.hbm [shape: f32[2,8,32], index: 2, kind: input, shape index: {}]   ;;  %s1525_s3 = inlined_call_operand.hbm [shape: f32[2,8,8], index: 3, kind: input, shape index: {}]   ;;  %s1526_s4 = inlined_call_operand.hbm [shape: f32[2,8,32], index: 4, kind: output, shape index: {0}]   ;;  %s1527_s5 = inlined_call_operand.hbm [shape: f32[2,8,8], index: 5, kind: output, shape index: {1}]  }
   0x1   :  { %1533 = sst [smem:[#allocation27_spill]] %s1523_s1 }
   0x2   :  { %11 = vsyncpa [#allocation7], 0 }
   0x3   :  { %13 = vsyncpa [#allocation7 + $0x1], 0 }
   0x4   :  { %14 = vsyncpa [#allocation10], 0 }
   0x5   :  { %16 = vsyncpa [#allocation10 + $0x1], 0 }
   0x6   :  { %17 = vsyncpa [#allocation13], 0 }
   0x7   :  { %19 = vsyncpa [#allocation13 + $0x1], 0 }
   0x8   :  { %20 = vsyncpa [#allocation8], 0 }
   0x9   :  { %22 = vsyncpa [#allocation8 + $0x1], 0 }
   0xa   :  { %23 = vsyncpa [#allocation16], 0 }
   0xb   :  { %25 = vsyncpa [#allocation16 + $0x1], 0  ;;  %s1250_s18 = smov 0   ;;  %s1252_s19 = smov 0  }
   0xc   :  { %s1254_s20 = smov 0   ;;  %s1256_s21 = smov 0  }
   0xd   :  { %s1258_s22 = smov 0   ;;  %s1260_s23 = smov 0  }
   0xe LB: > { %1534 = sst [smem:[#allocation22_spill]] %s1196_s20  ;;  %s1281_s24 = sadd.s32 4294967295, %s1208_s23   ;;  %s1208_s23 = sphi %s1260_s23, %s31_s23   ;;  %s1204_s22 = sphi %s1258_s22, %s1551_s22   ;;  %s1200_s21 = sphi %s1256_s21, %s1550_s21   ;;  %s1196_s20 = sphi %s1254_s20, %s1549_s20   ;;  %s1192_s19 = sphi %s1252_s19, %s1553_s19   ;;  %s1188_s18 = sphi %s1250_s18, %s1552_s18  }
   0xf   : > { %1535 = sst [smem:[#allocation23_spill]] %s1204_s22  ;;  %s843_s25 = sadd.s32 4294967294, %s1208_s23  }
  0x10   : > { %1536 = sst [smem:[#allocation24_spill]] %s1208_s23  ;;  %s50_s26 = sadd.s32 1, %s1204_s22 }
  0x11   : > { %s59_s27 = sadd.s32 1, %s1196_s20  ;;  %p52_p0 = scmp.ge.s32.totalorder %s50_s26, 2 }
  0x12   : > { %p66_p1 = scmp.ne.s32.totalorder %s1196_s20, %s1192_s19  ;;  %p67_p2 = scmp.eq.s32.totalorder %s1208_s23, 0 }
  0x13   : > { %p72_p3 = scmp.ne.s32.totalorder %s1192_s19, %s1188_s18  ;;  %s1555_s26 = smov (%p52_p0, %s50_s26), 0 }
  0x14   : > { %1537 = sst [smem:[#allocation25_spill]] %s1555_s26  ;;  %p1293_p4 = por %p67_p2, %p66_p1 }
  0x15   : > { %p73_p5 = scmp.eq.s32.totalorder %s1281_s24, 0  ;;  %s54_s29 = ssub.s32 %s1204_s22, %s1555_s26 }
  0x16   : > { %p184_p6 = scmp.eq.s32.totalorder %s1281_s24, 1  ;;  %p57_p7 = scmp.eq.s32.totalorder %s54_s29, 0 }
  0x17   : > { %p1301_p8 = por %p73_p5, %p72_p3  ;;  %p190_p10 = scmp.eq.s32.totalorder %s843_s25, 1 }
  0x18   : > { %p1305_p9 = por %p184_p6, %p66_p1  ;;  %p916_p13 = scmp.lt.s32.totalorder %s1208_s23, 2 }
  0x19   : > { %s1310_s7 = scalar_select %p57_p7, %s1196_s20, %s59_s27  }
  0x1a   : > { %p1312_p11 = por %p190_p10, %p72_p3  ;;  %s1319_s9 = sand.u32 1, %s1196_s20  }
  0x1b   : > { %1541 = sst [smem:[#allocation26_spill]] %s1310_s7  ;;  %s1322_s10 = sshll.u32 %s1319_s9, 3 }
  0x1c   : > { %s1325_s11 = sshll.u32 %s1204_s22, 7  ;;  %p1329_p0 = pnand %p916_p13, %p1293_p4 }
  0x1d   : > { %s257_s13 = sand.u32 1, %s1208_s23   ;;  %s1544_s1 = sld [smem:[#allocation27_spill]] }
  0x1e   : > { %s261_s17 = scalar_lea.vmem [#allocation9], %s1322_s10  ;;  %p854_p1 = scmp.ge.s32.totalorder %s1208_s23, 1 }
  0x1f   : > { %s269_s25 = sshll.u32 %s261_s17, 4  ;;  %p313_p2 = scmp.lt.s32.totalorder %s1208_s23, 3  ;;  %s270_s25 = int_to_ptr.vmem [resolvable:$true] %s269_s25 }
  0x20   : > { %s1341_s27 = scalar_lea.sflag [#allocation10], %s257_s13  ;;  %p980_p3 = pneg %p1329_p0 }
  0x21   : > { %s991_s28 = scalar_lea.vmem %s270_s25, 128  ;;  %s1210_s29 = smov [#allocation9]  }
  0x22   : > { %p992_p4 = scmp.ne.s32.totalorder %s270_s25, %s991_s28  ;;  %s996_s26 = sshll.u32 %s1210_s29, 4  ;;  %s997_s26 = int_to_ptr.vmem [resolvable:$false] %s996_s26 }
  0x23   : > { %s267_s16 = scalar_lea.hbm %s1544_s1, %s1325_s11  ;;  %s998_s14 = scalar_lea.vmem %s997_s26, 256 }
  0x24   : > { %p994_p5 = pnand %p992_p4, %p980_p3  ;;  %p999_p7 = scmp.lt.s32.totalorder %s270_s25, %s997_s26 }
  0x25   : > { %p1000_p10 = scmp.lt.s32.totalorder %s998_s14, %s991_s28 }
  0x26   : > { %p995_p6 = pneg %p994_p5 }
  0x27   : > { %p1001_p13 = por %p1000_p10, %p999_p7 }
  0x29   : > { %p1002_p12 = pnand %p1001_p13, %p995_p6 }
  0x2b   : > { %1005 = shalt.err (!%p1002_p12)
}
  0x2c   : > { %902 = dma.hbm_to_vmem [thread:$0]  (!%p1329_p0), %s267_s16, 128, %s270_s25, %s1341_s27  }
  0x2d   : > { %p1355_p4 = pnand %p854_p1, %p313_p2  ;;  %s248_s17 = scalar_lea.hbm %s1522_s0, %s1325_s11 }
  0x2e   : > { %s242_s28 = scalar_lea.vmem [#allocation6], %s1322_s10  ;;  %s286_s22 = scalar_lea.hbm %s1524_s2, %s1325_s11 }
  0x2f   : > { %s250_s29 = sshll.u32 %s242_s28, 4  ;;  %s239_s7 = scalar_lea.sflag [#allocation7], %s1319_s9  ;;  %s251_s29 = int_to_ptr.vmem [resolvable:$true] %s250_s29 }
  0x30   : > { %s1019_s20 = scalar_lea.vmem %s251_s29, 128  ;;  %s1211_s16 = smov [#allocation6]  }
  0x31   : > { %p1020_p12 = scmp.ne.s32.totalorder %s251_s29, %s1019_s20  ;;  %s1024_s25 = sshll.u32 %s1211_s16, 4  ;;  %s1025_s25 = int_to_ptr.vmem [resolvable:$false] %s1024_s25 }
  0x32   : > { %s1026_s23 = scalar_lea.vmem %s1025_s25, 256  ;;  %p1027_p5 = scmp.lt.s32.totalorder %s251_s29, %s1025_s25 }
  0x33   : > { %p1022_p1 = pnand %p1020_p12, %p980_p3  ;;  %p1028_p6 = scmp.lt.s32.totalorder %s1026_s23, %s1019_s20 }
  0x35   : > { %p1023_p2 = pneg %p1022_p1  ;;  %p1029_p7 = por %p1028_p6, %p1027_p5 }
  0x37   : > { %p1030_p10 = pnand %p1029_p7, %p1023_p2 }
  0x39   : > { %1033 = shalt.err (!%p1030_p10)
}
  0x3a   : > { %899 = dma.hbm_to_vmem [thread:$0]  (!%p1329_p0), %s248_s17, 128, %s251_s29, %s239_s7  }
  0x3b   : > { %s280_s1 = scalar_lea.vmem [#allocation11], %s1322_s10  ;;  %s1212_s28 = smov [#allocation11]  }
  0x3c   : > { %s288_s26 = sshll.u32 %s280_s1, 4  ;;  %s1052_s14 = sshll.u32 %s1212_s28, 4  ;;  %s289_s26 = int_to_ptr.vmem [resolvable:$true] %s288_s26  ;;  %s1053_s14 = int_to_ptr.vmem [resolvable:$false] %s1052_s14 }
  0x3d   : > { %s1047_s15 = scalar_lea.vmem %s289_s26, 128  ;;  %s1054_s20 = scalar_lea.vmem %s1053_s14, 256 }
  0x3e   : > { %p1048_p13 = scmp.ne.s32.totalorder %s289_s26, %s1047_s15  ;;  %p1055_p2 = scmp.lt.s32.totalorder %s289_s26, %s1053_s14 }
  0x3f   : > { %p1056_p5 = scmp.lt.s32.totalorder %s1054_s20, %s1047_s15 }
  0x40   : > { %p1050_p12 = pnand %p1048_p13, %p980_p3 }
  0x41   : > { %p1057_p6 = por %p1056_p5, %p1055_p2 }
  0x42   : > { %p1051_p1 = pneg %p1050_p12 }
  0x44   : > { %p1058_p7 = pnand %p1057_p6, %p1051_p1 }
  0x46   : > { %1061 = shalt.err (!%p1058_p7)
}
  0x47   : > { %905 = dma.hbm_to_vmem [thread:$0]  (!%p1329_p0), %s286_s22, 128, %s289_s26, %s1341_s27  }
  0x48   : > { %s306_s16 = scalar_lea.hbm %s1525_s3, %s1325_s11  ;;  %s299_s25 = scalar_lea.vmem [#allocation12], %s1322_s10 }
  0x49   : > { %s308_s1 = sshll.u32 %s299_s25, 4  ;;  %s296_s15 = scalar_lea.sflag [#allocation13], %s1319_s9  ;;  %s309_s1 = int_to_ptr.vmem [resolvable:$true] %s308_s1 }
  0x4a   : > { %s1075_s28 = scalar_lea.vmem %s309_s1, 128  ;;  %s1213_s14 = smov [#allocation12]  }
  0x4b   : > { %p1076_p10 = scmp.ne.s32.totalorder %s309_s1, %s1075_s28  ;;  %s1080_s20 = sshll.u32 %s1213_s14, 4  ;;  %s1081_s20 = int_to_ptr.vmem [resolvable:$false] %s1080_s20 }
  0x4c   : > { %s1082_s23 = scalar_lea.vmem %s1081_s20, 256  ;;  %p1083_p1 = scmp.lt.s32.totalorder %s309_s1, %s1081_s20 }
  0x4d   : > { %p1078_p13 = pnand %p1076_p10, %p980_p3  ;;  %p1084_p2 = scmp.lt.s32.totalorder %s1082_s23, %s1075_s28 }
  0x4f   : > { %p1079_p12 = pneg %p1078_p13  ;;  %p1085_p5 = por %p1084_p2, %p1083_p1 }
  0x51   : > { %p1086_p6 = pnand %p1085_p5, %p1079_p12 }
  0x53   : > { %1089 = shalt.err (!%p1086_p6)
}
  0x54   : > { %908 = dma.hbm_to_vmem [thread:$0]  (!%p1329_p0), %s306_s16, 128, %s309_s1, %s296_s15  }
  0x55   : > { %317 = sbr.rel (%p1355_p4) target bundleno = 905 (0x389), region = 36  ;;  %s1400_s22 = sand.u32 (!%p1355_p4), 1, %s1192_s19  }
  0x56   : > { %s1403_s9 = sshll.u32 (!%p1355_p4), %s1400_s22, 3  ;;  %s320_s10 = scalar_lea.sflag (!%p1355_p4), [#allocation7], %s1400_s22 }
  0x57   : > { %s323_s11 = scalar_lea.vmem (!%p1355_p4), [#allocation6], %s1403_s9 }
  0x5a   : > { %1167 = dma.done.wait (%p1301_p8), %s320_s10, 128  }
  0x5b   : > { %1169 = vsyncadd (%p1301_p8), %s320_s10, 4294967168  ;;  %s328_s12 = sand.u32 1, %s1281_s24   ;;  %s332_s13 = scalar_lea.vmem [#allocation9], %s1403_s9 }
  0x5c   : > { %s329_s27 = scalar_lea.sflag [#allocation10], %s328_s12 }
  0x5d   : > { %1171 = dma.done.wait (%p1301_p8), %s329_s27, 256  }
  0x5e   : > { %1173 = vsyncadd (%p1301_p8), %s329_s27, 4294967040  ;;  %s341_s26 = scalar_lea.vmem [#allocation11], %s1403_s9  ;;  %s347_s7 = scalar_lea.sflag [#allocation13], %s1400_s22 }
  0x5f   : > { %s350_s17 = scalar_lea.vmem [#allocation12], %s1403_s9 }
  0x60   : > { %1175 = dma.done.wait (%p1301_p8), %s347_s7, 128  }
  0x61   : > { %1177 = vsyncadd (%p1301_p8), %s347_s7, 4294967168  ;;  %vm404_vm0 = vcmask 261120   ;;  %v1214_v0 = vmov 0.0   ;;  %vm1215_vm1 = vmmov 0   ;;  %v407_v1 = vld [vmem:[%s332_s13] sm:$0xff]  ;;  %v406_v2 = vld [vmem:[%s323_s11] sm:$0xff] }
  0x62   : > { %874 = vmatprep.subr.mxu0 %v1214_v0  ;;  %405 = vst.msk [vmem:[#allocation4] sm:$0xff] %vm404_vm0, %v1214_v0  ;;  %876 = vmatprep.mubr.msk.f32.mxu0 %vm1215_vm1, %v1214_v0  ;;  %v409_v3 = vmul.f32 0.17677669, %v406_v2  ;;  %vm401_vm2 = vcmask 7168   ;;  %v1216_v4 = vmov -inf   ;;  %v487_v5 = vld [vmem:[%s350_s17] sm:$0xff] }
  0x63   : > { %879 = vmatprep.subr.mxu1 %v1214_v0  ;;  %881 = vmatprep.mubr.msk.f32.mxu1 %vm1215_vm1, %v1214_v0  ;;  %402 = vst.msk [vmem:[#allocation2] sm:$0xff] %vm401_vm2, %v1216_v4  ;;  %403 = vst.msk [vmem:[#allocation3] sm:$0xff] %vm401_vm2, %v1214_v0  ;;  %vm488_vm3 = vcmp.eq.f32.partialorder %v487_v5, 0.0  ;;  %vm491_vm4 = vcmask 64512   ;;  %v1217_v10 = vmov 0   ;;  %v408_v15 = vld [vmem:[%s341_s26] sm:$0xff] }
  0x64   : > { %875 = vmatpush3.xpose.msk.msra.mxu0 %vm404_vm0, %v407_v1  ;;  %970 = vset.pattern.permute.xlu0 %v1217_v10  ;;  %s1436_s24 = scalar_lea.vmem [#allocation15], %s1403_s9  ;;  %s866_s30 = sshll.u32 %s1200_s21, 7 }
  0x65   : > { %971 = vset.pattern.permute.xlu1 %v1217_v10  ;;  %880 = vmatpush3.msra.mxu1 %v408_v15  ;;  %s389_s29 = scalar_lea.vmem [#allocation14], %s1403_s9  ;;  %s1449_s15 = scalar_lea.hbm %s1526_s4, %s866_s30 }
  0x66   : > { %s642_s16 = sshll.u32 %s389_s29, 4  ;;  %s656_s28 = sshll.u32 %s1436_s24, 4  ;;  %s1451_s16 = int_to_ptr.vmem [resolvable:$true] %s642_s16  ;;  %s657_s28 = int_to_ptr.vmem [resolvable:$true] %s656_s28 }
  0x67   : > { %877 = vmatmul.mubr.msk.f32.vlgmr.msra.gmra.mxu0 %vm404_vm0, %v409_v3  ;;  %s623_s14 = scalar_lea.sflag [#allocation8], %s1400_s22  ;;  %s1090_s20 = scalar_lea.vmem %s1451_s16, 128 }
  0x68   : > { %p1091_p8 = scmp.ne.s32.totalorder %s1451_s16, %s1090_s20  ;;  %s1218_s23 = smov [#allocation14]  }
  0x69   : > { %v515_v29 = vld [vmem:[#allocation4] sm:$0xff]  ;;  %s1094_s9 = sshll.u32 %s1218_s23, 4  ;;  %s1095_s9 = int_to_ptr.vmem [resolvable:$false] %s1094_s9 }
  0x6a   : > { %v490_v11 = vld [vmem:[#allocation2] sm:$0xff]  ;;  %v507_v23 = vld [vmem:[#allocation3] sm:$0xff]  ;;  %p1092_p0 = pnand %p1091_p8, %p1305_p9  ;;  %s1096_s10 = scalar_lea.vmem %s1095_s9, 256 }
  0x6b   : > { %p1097_p4 = scmp.lt.s32.totalorder %s1451_s16, %s1095_s9  ;;  %p1098_p7 = scmp.lt.s32.totalorder %s1096_s10, %s1090_s20 }
  0x6c   : > { %p1093_p3 = pneg %p1092_p0 }
  0x6d   : > { %p1099_p10 = por %p1098_p7, %p1097_p4 }
  0x6f   : > { %p1100_p13 = pnand %p1099_p10, %p1093_p3 }
 0x127   : > { %v483_v6 = vpop.f32.mrf.mxu0 }
 0x128   : > { %v489_v7 = vsel %vm488_vm3, -1e+09, %v483_v6 }
 0x129   : > { %v878_v8 = vpop.f32.mrf.mxu0  ;;  %v492_v9 = vsel %vm491_vm4, %v489_v7, -inf }
 0x12a   : > { %493 = vmax.xlane.f32.xlu0 %v492_v9 }
 0x1b3   : > { %v494_v12 = vpop.xlane.xlu0 %493 }
 0x1b4   : > { %v495_v13 = vmax.f32 %v490_v11, %v494_v12 }
 0x1b6   : > { %v496_v14 = vsub.f32 %v490_v11, %v495_v13  ;;  %597 = vst.msk [vmem:[#allocation2] sm:$0xff] %vm401_vm2, %v495_v13  ;;  %501 = vperm.xlu0 %970, %v495_v13  }
 0x1b8   : > { %v497_v20 = vmul.f32 1.442695, %v496_v14 }
 0x231   : > { %v502_v16 = vpop.permute.xlu0 %501 }
 0x232   : > { %v504_v17 = vsub.f32 %v489_v7, %v502_v16 }
 0x234   : > { %v505_v18 = vmul.f32 1.442695, %v504_v17 }
 0x236   : > { %972 = vpow2.f32 %v505_v18 }
 0x237   : > { %974 = vpow2.f32 %v497_v20 }
 0x243   : > { %v973_v19 = vpop.eup %972 }
 0x244   : > { %882 = vmatmul.mubr.msk.f32.vlgmr.msra.gmra.mxu1 %vm491_vm4, %v973_v19  ;;  %v509_v21 = vsel %vm491_vm4, %v973_v19, 0.0  ;;  %598 = vst.msk [vmem:[%s1436_s24] sm:$0xff] %vm491_vm4, %v973_v19  ;;  %v975_v22 = vpop.eup %974 }
 0x245   : > { %510 = vadd.xlane.f32.xlu1 %v509_v21  ;;  %v508_v24 = vmul.f32 %v975_v22, %v507_v23 }
 0x24b   : > { %v614_v38 = vld [vmem:[%s1436_s24] sm:$0xff] }
 0x256   : > { %518 = vperm.xlu1 %971, %v975_v22  }
 0x2ce   : > { %v511_v25 = vpop.xlane.xlu1 %510 }
 0x2cf   : > { %v512_v26 = vadd.f32 %v511_v25, %v508_v24 }
 0x2d1   : > { %514 = vst.msk [vmem:[#allocation3] sm:$0xff] %vm401_vm2, %v512_v26 }
 0x2d2   : > { %v519_v30 = vpop.permute.xlu1 %518 }
 0x2d3   : > { %v521_v31 = vmul.f32 %v519_v30, %v515_v29 }
 0x2d8   : > { %v602_v27 = vld [vmem:[#allocation3] sm:$0xff] }
 0x2d9   : > { %976 = vrcp.f32 %v602_v27 }
 0x2e6   : > { %v977_v28 = vpop.eup %976 }
 0x2e7   : > { %607 = vperm.xlu1 %971, %v977_v28  }
 0x2eb   : > { %617 = vperm.xlu1 %971, %v977_v28  }
 0x304   : > { %v591_v32 = vpop.f32.mrf.mxu1 }
 0x305   : > { %v595_v33 = vadd.f32 %v591_v32, %v521_v31 }
 0x306   : > { %v883_v34 = vpop.f32.mrf.mxu1 }
 0x307   : > { %596 = vst.msk [vmem:[#allocation4] sm:$0xff] %vm404_vm0, %v595_v33 }
 0x30e   : > { %v603_v35 = vld [vmem:[#allocation4] sm:$0xff] }
 0x362   : > { %v608_v36 = vpop.permute.xlu1 %607 }
 0x363   : > { %v610_v37 = vmul.f32 %v608_v36, %v603_v35 }
 0x365   : > { %611 = vst.msk [vmem:[%s389_s29] sm:$0xff] %vm404_vm0, %v610_v37 }
 0x366   : > { %v618_v39 = vpop.permute.xlu1 %617 }
 0x367   : > { %1103 = shalt.err (!%p1100_p13)
}
 0x368   : > { %s1104_s11 = scalar_lea.hbm %s1449_s15, 128  ;;  %s1108_s13 = scalar_lea.hbm %s1526_s4, 256 }
 0x369   : > { %p1105_p12 = scmp.ne.s32.totalorder %s1449_s15, %s1104_s11  ;;  %p1109_p5 = scmp.lt.s32.totalorder %s1449_s15, %s1526_s4 }
 0x36a   : > { %p1110_p6 = scmp.lt.s32.totalorder %s1108_s13, %s1104_s11 }
 0x36b   : > { %p1106_p1 = pnand %p1105_p12, %p1305_p9 }
 0x36c   : > { %p1111_p8 = por %p1110_p6, %p1109_p5 }
 0x36d   : > { %p1107_p2 = pneg %p1106_p1 }
 0x36f   : > { %p1112_p0 = pnand %p1111_p8, %p1107_p2 }
 0x371   : > { %1115 = shalt.err (!%p1112_p0)
}
 0x372   : > { %892 = dma.vmem_to_hbm [thread:$0]  (%p1305_p9), %s1451_s16, 128, %s1449_s15, %s623_s14   ;;  %v620_v40 = vmul.f32 %v618_v39, %v614_v38 }
 0x373   : > { %s654_s25 = scalar_lea.hbm %s1527_s5, %s866_s30  ;;  %s628_s1 = scalar_lea.sflag [#allocation16], %s1400_s22 }
 0x374   : > { %621 = vst.msk [vmem:[%s1436_s24] sm:$0xff] %vm491_vm4, %v620_v40  ;;  %s1116_s20 = scalar_lea.vmem %s657_s28, 128  ;;  %s1219_s23 = smov [#allocation15]  }
 0x375   : > { %p1117_p3 = scmp.ne.s32.totalorder %s657_s28, %s1116_s20  ;;  %s1120_s9 = sshll.u32 %s1219_s23, 4  ;;  %s1121_s9 = int_to_ptr.vmem [resolvable:$false] %s1120_s9 }
 0x376   : > { %s1122_s16 = scalar_lea.vmem %s1121_s9, 256  ;;  %p1123_p10 = scmp.lt.s32.totalorder %s657_s28, %s1121_s9 }
 0x377   : > { %p1118_p4 = pnand %p1117_p3, %p1305_p9  ;;  %p1124_p13 = scmp.lt.s32.totalorder %s1122_s16, %s1116_s20 }
 0x379   : > { %p1119_p7 = pneg %p1118_p4  ;;  %p1125_p12 = por %p1124_p13, %p1123_p10 }
 0x37b   : > { %p1126_p1 = pnand %p1125_p12, %p1119_p7 }
 0x37d   : > { %1129 = shalt.err (!%p1126_p1)
}
 0x37e   : > { %s1130_s21 = scalar_lea.hbm %s654_s25, 128  ;;  %s1134_s30 = scalar_lea.hbm %s1527_s5, 256 }
 0x37f   : > { %p1131_p2 = scmp.ne.s32.totalorder %s654_s25, %s1130_s21  ;;  %p1135_p8 = scmp.lt.s32.totalorder %s654_s25, %s1527_s5 }
 0x380   : > { %p1136_p0 = scmp.lt.s32.totalorder %s1134_s30, %s1130_s21 }
 0x381   : > { %p1132_p5 = pnand %p1131_p2, %p1305_p9 }
 0x382   : > { %p1137_p3 = por %p1136_p0, %p1135_p8 }
 0x383   : > { %p1133_p6 = pneg %p1132_p5 }
 0x385   : > { %p1138_p4 = pnand %p1137_p3, %p1133_p6 }
 0x387   : > { %1141 = shalt.err (!%p1138_p4)
}
 0x388   : > { %893 = dma.vmem_to_hbm [thread:$0]  (%p1305_p9), %s657_s28, 128, %s654_s25, %s628_s1  }
 0x389 PF: > { %s1546_s10 = sld [smem:[#allocation24_spill]]  ;;  %s668_s11 = sand.u32 1, %s1188_s18  }
 0x38a   : > { %s669_s12 = scalar_lea.sflag [#allocation8], %s668_s11 }
 0x38f   : > { %p1547_p7 = scmp.ge.s32.totalorder %s1546_s10, 2 }
 0x391   : > { %p910_p10 = pnand %p1547_p7, %p1312_p11 }
 0x393   : > { %p911_p13 = pneg %p910_p10 }
 0x395   : > { %1179 = dma.done.wait (%p911_p13), %s669_s12, 128  }
 0x396   : > { %1181 = vsyncadd (%p911_p13), %s669_s12, 4294967168  ;;  %s678_s27 = scalar_lea.sflag [#allocation16], %s668_s11 }
 0x397   : > { %1183 = dma.done.wait (%p911_p13), %s678_s27, 128  }
 0x398   : > { %1185 = vsyncadd (%p911_p13), %s678_s27, 4294967168  ;;  %s31_s23 = sadd.s32 1, %s1546_s10   ;;  %s1548_s6 = sld [smem:[#allocation22_spill]] }
 0x399   : > { %p28_p12 = scmp.ge.s32.totalorder %s31_s23, 4   ;;  %s1549_s20 = sld [smem:[#allocation26_spill]] }
 0x39a   : > { %s1550_s21 = sld [smem:[#allocation23_spill]]  ;;  %s1552_s18 = smov %s1192_s19 }
 0x39b   : > { %s1551_s22 = sld [smem:[#allocation25_spill]]  ;;  %30 = sbr.rel (!%p28_p12) target bundleno = 14 (0xe), region = 143 }
 0x39e   : > { %s1553_s19 = smov %s1548_s6 }
 0x3a0   :  { %683 = vsyncpa [#allocation7], 1 }
 0x3a1   :  { %685 = vsyncpa [#allocation7 + $0x1], 1 }
 0x3a2   :  { %686 = vsyncpa [#allocation10], 1 }
 0x3a3   :  { %688 = vsyncpa [#allocation10 + $0x1], 1 }
 0x3a4   :  { %689 = vsyncpa [#allocation13], 1 }
 0x3a5   :  { %691 = vsyncpa [#allocation13 + $0x1], 1 }
 0x3a6   :  { %692 = vsyncpa [#allocation8], 1 }
 0x3a7   :  { %694 = vsyncpa [#allocation8 + $0x1], 1 }
 0x3a8   :  { %695 = vsyncpa [#allocation16], 1 }
 0x3a9   :  { %697 = vsyncpa [#allocation16 + $0x1], 1 }

</bundles_post_ra>
